<compile_context>
chip_gen: v7x
topology: tpu7x:2x2x1
jax: 0.10.0
libtpu: 0.0.40
codegen_flags: <defaults>
</compile_context>

<pallas_src>
import functools

import jax
import jax.numpy as jnp
from jax.experimental import pallas as pl
from jax.experimental.pallas import tpu as pltpu


LEAKY_SLOPE = 0.01   # nn.LeakyReLU() default negative_slope
MLP_SCALE = 0.01     # self.mlp_scale (folded into W_out in the wrapper)
LANE = 128


def _round_up(x, m):
    return ((x + m - 1) // m) * m


def _hybrid_kernel(x_ref, wcat_ref, *rest, fmap_cols):
    """One batch tile: fused (fmap | hidden0) matmul, remaining MLP, epilogue add."""
    *w_refs, o_ref = rest
    hidden_ws, wout_ref = w_refs[:-1], w_refs[-1]

    x = x_ref[...]                                     # (tm, input_dim) bf16

    # Fused first MXU call: [ padded W_fmap^T | W_0^T ]  ->  (tm, fmap_cols + width) f32
    r = jnp.dot(x, wcat_ref[...], preferred_element_type=jnp.float32)
    fmap = r[:, :fmap_cols]                            # lane-aligned slice (f32)
    h = r[:, fmap_cols:]                               # hidden layer 0 pre-activation
    h = jnp.where(h > 0, h, LEAKY_SLOPE * h)           # LeakyReLU in f32

    # Remaining hidden layers (bf16 operands, f32 accumulate, f32 activation).
    for w_ref in hidden_ws:
        h = jnp.dot(h.astype(w_ref.dtype), w_ref[...],
                    preferred_element_type=jnp.float32)
        h = jnp.where(h > 0, h, LEAKY_SLOPE * h)

    # Output projection (mlp_scale pre-folded into wout); lane-dense f32 store.
    o_ref[...] = fmap + jnp.dot(h.astype(wout_ref.dtype), wout_ref[...],
                                preferred_element_type=jnp.float32)


def hybrid_model_forward(x, w_fmap, mlp_ws, *, tile_m=None,
                         compute_dtype=jnp.bfloat16):
    """x: (N, >=input_dim) float32.  Weights in PyTorch (out, in) layout."""
    output_dim, input_dim = w_fmap.shape
    assert len(mlp_ws) >= 2, "expects at least one hidden layer + output layer"
    N = x.shape[0]
    verts = x[:, :input_dim].astype(compute_dtype)

    # Default: 2 parallel grid steps (megacore on v7x, negligible overhead on
    # 1-TC chips); cap tile rows so huge N keeps a VMEM-friendly working set.
    if tile_m is None:
        if N % 16 == 0:
            tile_m = N // 2
            while tile_m > 2048 and tile_m % 16 == 0:
                tile_m //= 2
        else:
            tile_m = N
    assert N % tile_m == 0
    assert tile_m % 8 == 0 or tile_m == N

    fmap_pad = _round_up(output_dim, LANE)

    def pad_lanes(wt):  # (in, out) -> (in, fmap_pad), zero-padded lanes
        if wt.shape[1] == fmap_pad:
            return wt
        return jnp.pad(wt, ((0, 0), (0, fmap_pad - wt.shape[1])))

    # Pre-transpose to (in, out), cast to bf16, zero-pad fmap/out to 128 lanes,
    # fuse [W_fmap^T | W_0^T] into one weight, fold mlp_scale into W_out.
    w_fmap_t = pad_lanes(w_fmap.T.astype(compute_dtype))              # (in, fmap_pad)
    w0_t = mlp_ws[0].T.astype(compute_dtype)                          # (in, width)
    w_cat = jnp.concatenate([w_fmap_t, w0_t], axis=1)                 # (in, fmap_pad+width)
    hidden_t = [w.T.astype(compute_dtype) for w in mlp_ws[1:-1]]      # (width, width) each
    w_out_t = pad_lanes((MLP_SCALE * mlp_ws[-1]).T.astype(compute_dtype))  # (width, fmap_pad)

    grid = (N // tile_m,)

    def weight_spec(shape):
        # Constant block index -> weight stays VMEM-resident across grid steps.
        return pl.BlockSpec(shape, lambda i: (0, 0))

    in_specs = [pl.BlockSpec((tile_m, input_dim), lambda i: (i, 0)),
                weight_spec(w_cat.shape)]
    in_specs += [weight_spec(w.shape) for w in hidden_t]
    in_specs += [weight_spec(w_out_t.shape)]

    out_padded = pl.pallas_call(
        functools.partial(_hybrid_kernel, fmap_cols=fmap_pad),
        out_shape=jax.ShapeDtypeStruct((N, fmap_pad), jnp.float32),
        grid_spec=pltpu.PrefetchScalarGridSpec(
            num_scalar_prefetch=0,
            grid=grid,
            in_specs=in_specs,
            out_specs=pl.BlockSpec((tile_m, fmap_pad), lambda i: (i, 0)),
        ),
        compiler_params=pltpu.CompilerParams(
            dimension_semantics=("parallel",)),
    )(verts, w_cat, *hidden_t, w_out_t)

    out = out_padded if fmap_pad == output_dim else out_padded[:, :output_dim]
    # .squeeze() matches PyTorch forward.
    return jnp.squeeze(out)


def xavier_uniform(key, shape):
    """nn.init.xavier_uniform_ for a Linear weight of shape (out, in)."""
    fan_out, fan_in = shape
    bound = (6.0 / (fan_in + fan_out)) ** 0.5
    return jax.random.uniform(key, shape, jnp.float32, minval=-bound, maxval=bound)


def make_params(key, input_dim, output_dim, depth, width):
    """Deterministic Xavier-uniform init of all weights (PyTorch (out, in) layout)."""
    keys = jax.random.split(key, depth + 2)
    w_fmap = xavier_uniform(keys[0], (output_dim, input_dim))
    mlp_ws = []
    prev = input_dim
    for d in range(depth):
        mlp_ws.append(xavier_uniform(keys[1 + d], (width, prev)))
        prev = width
    mlp_ws.append(xavier_uniform(keys[1 + depth], (output_dim, prev)))
    return w_fmap, mlp_ws


def reference_forward_f32(x, w_fmap, mlp_ws):
    """Pure-JAX f32 reference mirroring the PyTorch module."""
    input_dim = w_fmap.shape[1]
    verts = x[:, :input_dim]
    fmap = verts @ w_fmap.T
    h = verts
    for w in mlp_ws[:-1]:
        h = h @ w.T
        h = jnp.where(h > 0, h, LEAKY_SLOPE * h)
    t = h @ mlp_ws[-1].T
    return jnp.squeeze(fmap + MLP_SCALE * t)


def reference_forward_bf16(x, w_fmap, mlp_ws):
    """Reference with the same bf16-operand / f32-accumulate casts as the kernel."""
    bf16 = jnp.bfloat16
    input_dim = w_fmap.shape[1]
    verts = x[:, :input_dim].astype(bf16)
    fmap = jnp.dot(verts, w_fmap.T.astype(bf16), preferred_element_type=jnp.float32)
    h = jnp.dot(verts, mlp_ws[0].T.astype(bf16), preferred_element_type=jnp.float32)
    h = jnp.where(h > 0, h, LEAKY_SLOPE * h)
    for w in mlp_ws[1:-1]:
        h = jnp.dot(h.astype(bf16), w.T.astype(bf16), preferred_element_type=jnp.float32)
        h = jnp.where(h > 0, h, LEAKY_SLOPE * h)
    t = jnp.dot(h.astype(bf16), mlp_ws[-1].T.astype(bf16),
                preferred_element_type=jnp.float32)
    return jnp.squeeze(fmap + MLP_SCALE * t)


if __name__ == "__main__":
    input_dim = 32
    output_dim = 32
    depth = 4
    width = 128
    N = 256

    key = jax.random.PRNGKey(0)
    kx, kp = jax.random.split(key)
    x = jax.random.normal(kx, (N, input_dim), jnp.float32)
    w_fmap, mlp_ws = make_params(kp, input_dim, output_dim, depth, width)

    fwd = jax.jit(hybrid_model_forward)
    out = fwd(x, w_fmap, mlp_ws)
    out = jax.block_until_ready(out)

    # Tight check against a reference with identical bf16-operand casts
    # (only difference: mlp_scale folded into the bf16 output weight).
    ref_bf16 = reference_forward_bf16(x, w_fmap, mlp_ws)
    assert out.shape == ref_bf16.shape
    assert jnp.allclose(out, ref_bf16, atol=1e-3, rtol=1e-3)

    # Loose check against the full-f32 PyTorch-equivalent reference
    # (bf16 MXU operands introduce ~0.4% relative error).
    ref_f32 = reference_forward_f32(x, w_fmap, mlp_ws)
    assert out.shape == ref_f32.shape
    assert jnp.allclose(out, ref_f32, atol=5e-2, rtol=5e-2)

    print("KERNEL_OK")
</pallas_src>

<mosaic_0001>
module attributes {stable_mosaic.version = 11 : i64} {
  func.func @_hybrid_kernel(%arg0: i32, %arg1: memref<128x32xbf16, #tpu.memory_space<vmem>>, %arg2: memref<32x256xbf16, #tpu.memory_space<vmem>>, %arg3: memref<128x128xbf16, #tpu.memory_space<vmem>>, %arg4: memref<128x128xbf16, #tpu.memory_space<vmem>>, %arg5: memref<128x128xbf16, #tpu.memory_space<vmem>>, %arg6: memref<128x128xbf16, #tpu.memory_space<vmem>>, %arg7: memref<128x128xf32, #tpu.memory_space<vmem>>) attributes {dimension_semantics = [#tpu.dimension_semantics<parallel>], iteration_bounds = array<i64: 2>, scalar_prefetch = 0 : i64, scratch_operands = 0 : i64, tpu.core_type = #tpu.core_type<tc>, window_params = [{transform_indices = @transform_0, window_bounds = array<i64: 128, 32>}, {pipeline_mode = #tpu.pipeline_mode<synchronous>, transform_indices = @transform_1, window_bounds = array<i64: 32, 256>}, {pipeline_mode = #tpu.pipeline_mode<synchronous>, transform_indices = @transform_2, window_bounds = array<i64: 128, 128>}, {pipeline_mode = #tpu.pipeline_mode<synchronous>, transform_indices = @transform_3, window_bounds = array<i64: 128, 128>}, {pipeline_mode = #tpu.pipeline_mode<synchronous>, transform_indices = @transform_4, window_bounds = array<i64: 128, 128>}, {pipeline_mode = #tpu.pipeline_mode<synchronous>, transform_indices = @transform_5, window_bounds = array<i64: 128, 128>}, {transform_indices = @transform_6, window_bounds = array<i64: 128, 128>}]} {
    %c0 = arith.constant 0 : index
    %c0_0 = arith.constant 0 : index
    %0 = vector.load %arg1[%c0, %c0_0] : memref<128x32xbf16, #tpu.memory_space<vmem>>, vector<128x32xbf16>
    %c0_1 = arith.constant 0 : index
    %c0_2 = arith.constant 0 : index
    %1 = vector.load %arg2[%c0_1, %c0_2] : memref<32x256xbf16, #tpu.memory_space<vmem>>, vector<32x256xbf16>
    %cst = arith.constant dense<0.000000e+00> : vector<128x256xf32>
    %2 = tpu.matmul %0, %1, %cst {dimension_numbers = #tpu.dot_dimension_numbers<[1], [0], [0], [1], [0, 0, 1, 1], [], []>} : vector<128x32xbf16>, vector<32x256xbf16>, vector<128x256xf32> -> vector<128x256xf32>
    %3 = vector.extract_strided_slice %2 {offsets = [0, 0], sizes = [128, 128], strides = [1, 1]} : vector<128x256xf32> to vector<128x128xf32>
    %4 = vector.extract_strided_slice %2 {offsets = [0, 128], sizes = [128, 128], strides = [1, 1]} : vector<128x256xf32> to vector<128x128xf32>
    %cst_3 = arith.constant 0.000000e+00 : f32
    %5 = vector.broadcast %cst_3 : f32 to vector<128x128xf32>
    %6 = arith.cmpf ogt, %4, %5 : vector<128x128xf32>
    %cst_4 = arith.constant 0.00999999977 : f32
    %7 = vector.broadcast %cst_4 : f32 to vector<128x128xf32>
    %8 = arith.mulf %7, %4 : vector<128x128xf32>
    %9 = arith.select %6, %4, %8 : vector<128x128xi1>, vector<128x128xf32>
    %10 = arith.truncf %9 : vector<128x128xf32> to vector<128x128xbf16>
    %c0_5 = arith.constant 0 : index
    %c0_6 = arith.constant 0 : index
    %11 = vector.load %arg3[%c0_5, %c0_6] : memref<128x128xbf16, #tpu.memory_space<vmem>>, vector<128x128xbf16>
    %cst_7 = arith.constant dense<0.000000e+00> : vector<128x128xf32>
    %12 = tpu.matmul %10, %11, %cst_7 {dimension_numbers = #tpu.dot_dimension_numbers<[1], [0], [0], [1], [0, 0, 1, 1], [], []>} : vector<128x128xbf16>, vector<128x128xbf16>, vector<128x128xf32> -> vector<128x128xf32>
    %cst_8 = arith.constant 0.000000e+00 : f32
    %13 = vector.broadcast %cst_8 : f32 to vector<128x128xf32>
    %14 = arith.cmpf ogt, %12, %13 : vector<128x128xf32>
    %cst_9 = arith.constant 0.00999999977 : f32
    %15 = vector.broadcast %cst_9 : f32 to vector<128x128xf32>
    %16 = arith.mulf %15, %12 : vector<128x128xf32>
    %17 = arith.select %14, %12, %16 : vector<128x128xi1>, vector<128x128xf32>
    %18 = arith.truncf %17 : vector<128x128xf32> to vector<128x128xbf16>
    %c0_10 = arith.constant 0 : index
    %c0_11 = arith.constant 0 : index
    %19 = vector.load %arg4[%c0_10, %c0_11] : memref<128x128xbf16, #tpu.memory_space<vmem>>, vector<128x128xbf16>
    %cst_12 = arith.constant dense<0.000000e+00> : vector<128x128xf32>
    %20 = tpu.matmul %18, %19, %cst_12 {dimension_numbers = #tpu.dot_dimension_numbers<[1], [0], [0], [1], [0, 0, 1, 1], [], []>} : vector<128x128xbf16>, vector<128x128xbf16>, vector<128x128xf32> -> vector<128x128xf32>
    %cst_13 = arith.constant 0.000000e+00 : f32
    %21 = vector.broadcast %cst_13 : f32 to vector<128x128xf32>
    %22 = arith.cmpf ogt, %20, %21 : vector<128x128xf32>
    %cst_14 = arith.constant 0.00999999977 : f32
    %23 = vector.broadcast %cst_14 : f32 to vector<128x128xf32>
    %24 = arith.mulf %23, %20 : vector<128x128xf32>
    %25 = arith.select %22, %20, %24 : vector<128x128xi1>, vector<128x128xf32>
    %26 = arith.truncf %25 : vector<128x128xf32> to vector<128x128xbf16>
    %c0_15 = arith.constant 0 : index
    %c0_16 = arith.constant 0 : index
    %27 = vector.load %arg5[%c0_15, %c0_16] : memref<128x128xbf16, #tpu.memory_space<vmem>>, vector<128x128xbf16>
    %cst_17 = arith.constant dense<0.000000e+00> : vector<128x128xf32>
    %28 = tpu.matmul %26, %27, %cst_17 {dimension_numbers = #tpu.dot_dimension_numbers<[1], [0], [0], [1], [0, 0, 1, 1], [], []>} : vector<128x128xbf16>, vector<128x128xbf16>, vector<128x128xf32> -> vector<128x128xf32>
    %cst_18 = arith.constant 0.000000e+00 : f32
    %29 = vector.broadcast %cst_18 : f32 to vector<128x128xf32>
    %30 = arith.cmpf ogt, %28, %29 : vector<128x128xf32>
    %cst_19 = arith.constant 0.00999999977 : f32
    %31 = vector.broadcast %cst_19 : f32 to vector<128x128xf32>
    %32 = arith.mulf %31, %28 : vector<128x128xf32>
    %33 = arith.select %30, %28, %32 : vector<128x128xi1>, vector<128x128xf32>
    %34 = arith.truncf %33 : vector<128x128xf32> to vector<128x128xbf16>
    %c0_20 = arith.constant 0 : index
    %c0_21 = arith.constant 0 : index
    %35 = vector.load %arg6[%c0_20, %c0_21] : memref<128x128xbf16, #tpu.memory_space<vmem>>, vector<128x128xbf16>
    %cst_22 = arith.constant dense<0.000000e+00> : vector<128x128xf32>
    %36 = tpu.matmul %34, %35, %cst_22 {dimension_numbers = #tpu.dot_dimension_numbers<[1], [0], [0], [1], [0, 0, 1, 1], [], []>} : vector<128x128xbf16>, vector<128x128xbf16>, vector<128x128xf32> -> vector<128x128xf32>
    %37 = arith.addf %3, %36 : vector<128x128xf32>
    %c0_23 = arith.constant 0 : index
    %c0_24 = arith.constant 0 : index
    %38 = vector.load %arg7[%c0_23, %c0_24] : memref<128x128xf32, #tpu.memory_space<vmem>>, vector<128x128xf32>
    tpu.vector_store %arg7[%c0_23, %c0_24], %37 {strides = array<i32>} : memref<128x128xf32, #tpu.memory_space<vmem>>, vector<128x128xf32>,
    return
  }
  func.func @transform_0(%arg0: i32) -> (i32, i32) {
    %c0_i32 = arith.constant 0 : i32
    %c0_i32_0 = arith.constant 0 : i32
    return %arg0, %c0_i32 : i32, i32
  }
  func.func @transform_1(%arg0: i32) -> (i32, i32) {
    %c0_i32 = arith.constant 0 : i32
    %c0_i32_0 = arith.constant 0 : i32
    %c0_i32_1 = arith.constant 0 : i32
    return %c0_i32, %c0_i32_0 : i32, i32
  }
  func.func @transform_2(%arg0: i32) -> (i32, i32) {
    %c0_i32 = arith.constant 0 : i32
    %c0_i32_0 = arith.constant 0 : i32
    %c0_i32_1 = arith.constant 0 : i32
    return %c0_i32, %c0_i32_0 : i32, i32
  }
  func.func @transform_3(%arg0: i32) -> (i32, i32) {
    %c0_i32 = arith.constant 0 : i32
    %c0_i32_0 = arith.constant 0 : i32
    %c0_i32_1 = arith.constant 0 : i32
    return %c0_i32, %c0_i32_0 : i32, i32
  }
  func.func @transform_4(%arg0: i32) -> (i32, i32) {
    %c0_i32 = arith.constant 0 : i32
    %c0_i32_0 = arith.constant 0 : i32
    %c0_i32_1 = arith.constant 0 : i32
    return %c0_i32, %c0_i32_0 : i32, i32
  }
  func.func @transform_5(%arg0: i32) -> (i32, i32) {
    %c0_i32 = arith.constant 0 : i32
    %c0_i32_0 = arith.constant 0 : i32
    %c0_i32_1 = arith.constant 0 : i32
    return %c0_i32, %c0_i32_0 : i32, i32
  }
  func.func @transform_6(%arg0: i32) -> (i32, i32) {
    %c0_i32 = arith.constant 0 : i32
    %c0_i32_0 = arith.constant 0 : i32
    return %arg0, %c0_i32 : i32, i32
  }
}

</mosaic_0001>

<bundles_post_ra>
// kernel: hybrid_model_forward.1
= control target key start
LH: loop header
LB: loop body
LE: loop exit
PB: predicated region body
PF: predicated region fallthrough
CT: control target
= control target key end

     0   :  { %s1800_s21 = smov 0   ;;  %s2013_s0 = inlined_call_operand.vmem [shape: bf16[256,32], index: 0, kind: input, shape index: {}]   ;;  %s2014_s1 = inlined_call_operand.vmem [shape: bf16[32,256], index: 1, kind: input, shape index: {}]   ;;  %s2015_s2 = inlined_call_operand.vmem [shape: bf16[128,128], index: 2, kind: input, shape index: {}]   ;;  %s2016_s3 = inlined_call_operand.vmem [shape: bf16[128,128], index: 3, kind: input, shape index: {}]   ;;  %s2017_s4 = inlined_call_operand.vmem [shape: bf16[128,128], index: 4, kind: input, shape index: {}]   ;;  %s2018_s5 = inlined_call_operand.vmem [shape: bf16[128,128], index: 5, kind: input, shape index: {}]   ;;  %s2019_s6 = inlined_call_operand.vmem [shape: f32[256,128], index: 6, kind: output, shape index: {}]  }
   0x1 LB: > { %s1430_s22 = sadd.s32 4294967295, %s1762_s21   ;;  %p1434_p0 = scmp.ge.s32.totalorder %s1762_s21, 1  ;;  %s1762_s21 = sphi %s1800_s21, %s16_s21  }
   0x2   : > { %p213_p1 = scmp.lt.s32.totalorder %s1762_s21, 3 }
   0x4   : > { %p214_p2 = pnand %p1434_p0, %p213_p1 }
   0x5   : > { %v1710_v0 = vld [vmem:[%s2014_s1 + $0x4] ss:$8 sps:$4 sm:$0xff] (!%p214_p2)   ;;  %s1435_s25 = sshll.u32 (!%p214_p2), %s1430_s22, 4  ;;  %v1712_v1 = vld [vmem:[%s2014_s1] ss:$8 sps:$4 sm:$0xff] (!%p214_p2)   ;;  %v1764_v2 = vmov (!%p214_p2), 0  }
   0x6   : > { %217 = sbr.rel (%p214_p2) target bundleno = 1174 (0x496), region = 44  ;;  %393 = vmatprep.mubr.bf16.mxu0 (!%p214_p2), %v1764_v2  ;;  %p244_p3 = scmp.lt.s32.totalorder (!%p214_p2), %s1435_s25, 31  ;;  %361 = vmatprep.subr.bf16.mxu0 (!%p214_p2), %v1710_v0  ;;  %v1713_v3 = vld [vmem:[%s2014_s1 + $0x14] ss:$8 sps:$4 sm:$0xff] (!%p214_p2)   ;;  %v1715_v4 = vld [vmem:[%s2014_s1 + $0x10] ss:$8 sps:$4 sm:$0xff] (!%p214_p2)  }
   0x7   : > { %362 = vmatpush1.bf16.msra.mxu0 (!%p214_p2), %v1712_v1  ;;  %v1724_v5 = vld [vmem:[%s2015_s2] sm:$0xff] (!%p214_p2)   ;;  %v1725_v6 = vld [vmem:[%s2015_s2 + $0x8] sm:$0xff] (!%p214_p2)   ;;  %v1726_v7 = vld [vmem:[%s2015_s2 + $0x10] sm:$0xff] (!%p214_p2)   ;;  %vm336_vm0 = vcmask (!%p214_p2), 261120  }
   0x8   : > { %363 = vmatprep.subr.bf16.mxu0 (!%p214_p2), %v1713_v3  ;;  %1557 = vmatprep.subr.bf16.mxu1 (!%p214_p2), %v1724_v5  ;;  %v1727_v9 = vld [vmem:[%s2015_s2 + $0x18] sm:$0xff] (!%p214_p2)   ;;  %v1728_v17 = vld [vmem:[%s2015_s2 + $0x20] sm:$0xff] (!%p214_p2)   ;;  %v1729_v18 = vld [vmem:[%s2015_s2 + $0x28] sm:$0xff] (!%p214_p2)  }
   0x9   : > { %1558 = vmatpush3.bf16.msra.mxu1 (!%p214_p2), %v1724_v5  ;;  %v1730_v19 = vld [vmem:[%s2015_s2 + $0x30] sm:$0xff] (!%p214_p2)   ;;  %v1731_v20 = vld [vmem:[%s2015_s2 + $0x38] sm:$0xff] (!%p214_p2)   ;;  %v1732_v21 = vld [vmem:[%s2016_s3] sm:$0xff] (!%p214_p2)  }
   0xa   : > { %1559 = vmatprep.subr.bf16.mxu1 (!%p214_p2), %v1725_v6  ;;  %v1733_v40 = vld [vmem:[%s2016_s3 + $0x8] sm:$0xff] (!%p214_p2)   ;;  %v1734_v46 = vld [vmem:[%s2016_s3 + $0x10] sm:$0xff] (!%p214_p2)   ;;  %v1735_v51 = vld [vmem:[%s2016_s3 + $0x18] sm:$0xff] (!%p214_p2)  }
   0xb   : > { %364 = vmatpush1.bf16.msra.mxu0 (!%p214_p2), %v1715_v4  ;;  %v1736_v57 = vld [vmem:[%s2016_s3 + $0x20] sm:$0xff] (!%p214_p2)   ;;  %v1737_v62 = vld [vmem:[%s2016_s3 + $0x28] sm:$0xff] (!%p214_p2)  }
   0xd   : > { %s2021_s25 = smov (!%p244_p3, %s1435_s25), 31  ;;  %1560 = vmatpush3.bf16.msra.mxu1 %v1725_v6 }
   0xe   : > { %s1436_s12 = sshll.u32 %s2021_s25, 2  ;;  %1561 = vmatprep.subr.bf16.mxu1 %v1726_v7  ;;  %s1438_s10 = sshll.u32 %s2021_s25, 3 }
   0xf   : > { %s1832_s15 = scalar_lea.vmem %s2013_s0, %s1436_s12  ;;  %s1976_s13 = scalar_lea.vmem %s2019_s6, %s1438_s10 }
  0x10   : > { %v1716_v8 = vld [vmem:[%s1832_s15] sm:$0xff]   ;;  %v1717_v10 = vld [vmem:[%s1832_s15 + $0x8] sm:$0xff]   ;;  %v1718_v11 = vld [vmem:[%s1832_s15 + $0x10] sm:$0xff]  }
  0x11   : > { %1451 = vmatmul.mubr.msk.bf16.vlgmr.msra.gmra.mrb[0].mxu0 %vm336_vm0, %v1716_v8  ;;  %1562 = vmatpush3.bf16.msra.mxu1 %v1726_v7  ;;  %v1719_v12 = vld [vmem:[%s1832_s15 + $0x18] sm:$0xff]   ;;  %v1720_v13 = vld [vmem:[%s1832_s15 + $0x20] sm:$0xff]   ;;  %v1721_v14 = vld [vmem:[%s1832_s15 + $0x28] sm:$0xff]  }
  0x12   : > { %403 = vmatprep.mubr.bf16.mxu0 %v1764_v2  ;;  %1563 = vmatprep.subr.bf16.mxu1 %v1727_v9  ;;  %v1722_v15 = vld [vmem:[%s1832_s15 + $0x30] sm:$0xff]   ;;  %v1723_v16 = vld [vmem:[%s1832_s15 + $0x38] sm:$0xff]  }
  0x15   : > { %1564 = vmatpush3.bf16.msra.mxu1 %v1727_v9 }
  0x16   : > { %1565 = vmatprep.subr.bf16.mxu1 %v1728_v17 }
  0x19   : > { %1452 = vmatmul.mubr.msk.bf16.gmra.mrb[4].mxu0 %vm336_vm0, %v1717_v10  ;;  %1566 = vmatpush3.bf16.msra.mxu1 %v1728_v17 }
  0x1a   : > { %413 = vmatprep.mubr.bf16.mxu0 %v1764_v2  ;;  %1567 = vmatprep.subr.bf16.mxu1 %v1729_v18 }
  0x1d   : > { %1568 = vmatpush3.bf16.msra.mxu1 %v1729_v18 }
  0x1e   : > { %1569 = vmatprep.subr.bf16.mxu1 %v1730_v19 }
  0x21   : > { %1453 = vmatmul.mubr.msk.bf16.gmra.mrb[8].mxu0 %vm336_vm0, %v1718_v11  ;;  %1570 = vmatpush3.bf16.msra.mxu1 %v1730_v19 }
  0x22   : > { %423 = vmatprep.mubr.bf16.mxu0 %v1764_v2  ;;  %1571 = vmatprep.subr.bf16.mxu1 %v1731_v20 }
  0x25   : > { %1572 = vmatpush3.bf16.msra.mxu1 %v1731_v20 }
  0x26   : > { %1589 = vmatprep.subr.bf16.mxu1 %v1732_v21 }
  0x29   : > { %1454 = vmatmul.mubr.msk.bf16.gmra.mrb[12].mxu0 %vm336_vm0, %v1719_v12 }
  0x2a   : > { %433 = vmatprep.mubr.bf16.mxu0 %v1764_v2 }
  0x31   : > { %1455 = vmatmul.mubr.msk.bf16.gmra.mrb[16].mxu0 %vm336_vm0, %v1720_v13 }
  0x32   : > { %443 = vmatprep.mubr.bf16.mxu0 %v1764_v2 }
  0x39   : > { %1456 = vmatmul.mubr.msk.bf16.gmra.mrb[20].mxu0 %vm336_vm0, %v1721_v14 }
  0x3a   : > { %453 = vmatprep.mubr.bf16.mxu0 %v1764_v2 }
  0x41   : > { %1457 = vmatmul.mubr.msk.bf16.gmra.mrb[24].mxu0 %vm336_vm0, %v1722_v15 }
  0x42   : > { %463 = vmatprep.mubr.bf16.mxu0 %v1764_v2 }
  0x49   : > { %1458 = vmatmul.mubr.msk.bf16.gmra.mrb[28].mxu0 %vm336_vm0, %v1723_v16 }
  0xe4   : > { %v1871_v22 = vpop.f32.mrb[0].mxu0 }
  0xe5   : > { %v397_v23 = vpop.f32.mrb[1].mxu0 }
  0xe6   : > { %v490_v24 = vmul.f32 0.01, %v397_v23  ;;  %v1873_v25 = vpop.f32.mrb[2].mxu0  ;;  %vm474_vm1 = vcmp.gt.f32.partialorder %v397_v23, 0.0 }
  0xe7   : > { %v401_v26 = vpop.f32.mrb[3].mxu0 }
  0xe8   : > { %v491_v27 = vmul.f32 0.01, %v401_v26  ;;  %vm475_vm2 = vcmp.gt.f32.partialorder %v401_v26, 0.0  ;;  %v506_v28 = vsel %vm474_vm1, %v397_v23, %v490_v24 }
  0xea   : > { %v507_v29 = vsel %vm475_vm2, %v401_v26, %v491_v27 }
  0xeb   : > { %v522_v30 = vpack.c.bf16 %v507_v29, %v506_v28 }
  0xec   : > { %v1875_v31 = vpop.f32.mrb[4].mxu0 }
  0xed   : > { %v407_v32 = vpop.f32.mrb[5].mxu0  ;;  %1573 = vmatprep.mubr.bf16.mxu1 %v522_v30 }
  0xee   : > { %v492_v33 = vmul.f32 0.01, %v407_v32  ;;  %v1877_v34 = vpop.f32.mrb[6].mxu0  ;;  %vm476_vm3 = vcmp.gt.f32.partialorder %v407_v32, 0.0 }
  0xef   : > { %v411_v35 = vpop.f32.mrb[7].mxu0 }
  0xf0   : > { %vm477_vm4 = vcmp.gt.f32.partialorder %v411_v35, 0.0  ;;  %v493_v36 = vmul.f32 0.01, %v411_v35  ;;  %v508_v37 = vsel %vm476_vm3, %v407_v32, %v492_v33 }
  0xf2   : > { %v509_v38 = vsel %vm477_vm4, %v411_v35, %v493_v36 }
  0xf3   : > { %v523_v39 = vpack.c.bf16 %v509_v38, %v508_v37 }
  0xf4   : > { %v1882_v41 = vpop.f32.mrb[8].mxu0 }
  0xf5   : > { %v417_v42 = vpop.f32.mrb[9].mxu0  ;;  %1574 = vmatmul.mubr.bf16.vlgmr.msra.gmra.mrb[0].mxu1 %v523_v39  ;;  %v1738_v39 = vld [vmem:[%s2016_s3 + $0x30] sm:$0xff]  }
  0xf6   : > { %v494_v43 = vmul.f32 0.01, %v417_v42  ;;  %v1884_v44 = vpop.f32.mrb[10].mxu0  ;;  %1590 = vmatpush3.bf16.msra.mxu1 %v1732_v21  ;;  %vm478_vm5 = vcmp.gt.f32.partialorder %v417_v42, 0.0 }
  0xf7   : > { %v421_v45 = vpop.f32.mrb[11].mxu0  ;;  %1591 = vmatprep.subr.bf16.mxu1 %v1733_v40 }
  0xf8   : > { %vm479_vm6 = vcmp.gt.f32.partialorder %v421_v45, 0.0  ;;  %v495_v47 = vmul.f32 0.01, %v421_v45  ;;  %v510_v48 = vsel %vm478_vm5, %v417_v42, %v494_v43  ;;  %v1740_v42 = vld [vmem:[%s2017_s4] sm:$0xff]   ;;  %v1741_v43 = vld [vmem:[%s2017_s4 + $0x8] sm:$0xff]  }
  0xf9   : > { %1621 = vmatprep.subr.bf16.mxu0 %v1740_v42 }
  0xfa   : > { %v511_v49 = vsel %vm479_vm6, %v421_v45, %v495_v47  ;;  %1592 = vmatpush3.bf16.msra.mxu1 %v1733_v40  ;;  %v1739_v40 = vld [vmem:[%s2016_s3 + $0x38] sm:$0xff]   ;;  %1622 = vmatpush3.bf16.msra.mxu0 %v1740_v42  ;;  %v1742_v45 = vld [vmem:[%s2017_s4 + $0x10] sm:$0xff]   ;;  %v1744_v47 = vld [vmem:[%s2017_s4 + $0x20] sm:$0xff]  }
  0xfb   : > { %v524_v50 = vpack.c.bf16 %v511_v49, %v510_v48  ;;  %1593 = vmatprep.subr.bf16.mxu1 %v1734_v46  ;;  %1623 = vmatprep.subr.bf16.mxu0 %v1741_v43  ;;  %v1745_v48 = vld [vmem:[%s2017_s4 + $0x28] sm:$0xff]  }
  0xfc   : > { %v1892_v52 = vpop.f32.mrb[12].mxu0 }
  0xfd   : > { %v427_v53 = vpop.f32.mrb[13].mxu0  ;;  %1577 = vmatprep.mubr.bf16.mxu1 %v524_v50 }
  0xfe   : > { %v496_v54 = vmul.f32 0.01, %v427_v53  ;;  %v1894_v55 = vpop.f32.mrb[14].mxu0  ;;  %1594 = vmatpush3.bf16.msra.mxu1 %v1734_v46  ;;  %vm480_vm7 = vcmp.gt.f32.partialorder %v427_v53, 0.0  ;;  %1624 = vmatpush3.bf16.msra.mxu0 %v1741_v43  ;;  %v1743_v46 = vld [vmem:[%s2017_s4 + $0x18] sm:$0xff]  }
  0xff   : > { %v431_v56 = vpop.f32.mrb[15].mxu0  ;;  %1595 = vmatprep.subr.bf16.mxu1 %v1735_v51  ;;  %1625 = vmatprep.subr.bf16.mxu0 %v1742_v45 }
 0x100   : > { %vm481_vm8 = vcmp.gt.f32.partialorder %v431_v56, 0.0  ;;  %v497_v58 = vmul.f32 0.01, %v431_v56  ;;  %v512_v59 = vsel %vm480_vm7, %v427_v53, %v496_v54 }
 0x102   : > { %v513_v60 = vsel %vm481_vm8, %v431_v56, %v497_v58  ;;  %1596 = vmatpush3.bf16.msra.mxu1 %v1735_v51  ;;  %1626 = vmatpush3.bf16.msra.mxu0 %v1742_v45 }
 0x103   : > { %v525_v61 = vpack.c.bf16 %v513_v60, %v512_v59  ;;  %1597 = vmatprep.subr.bf16.mxu1 %v1736_v57  ;;  %1627 = vmatprep.subr.bf16.mxu0 %v1743_v46 }
 0x104   : > { %v1902_v63 = vpop.f32.mrb[16].mxu0 }
 0x105   : > { %v437_v0 = vpop.f32.mrb[17].mxu0  ;;  %1578 = vmatmul.mubr.bf16.gmra.mrb[4].mxu1 %v525_v61 }
 0x106   : > { %v498_v1 = vmul.f32 0.01, %v437_v0  ;;  %v1904_v2 = vpop.f32.mrb[18].mxu0  ;;  %1598 = vmatpush3.bf16.msra.mxu1 %v1736_v57  ;;  %vm482_vm9 = vcmp.gt.f32.partialorder %v437_v0, 0.0  ;;  %1628 = vmatpush3.bf16.msra.mxu0 %v1743_v46 }
 0x107   : > { %v441_v3 = vpop.f32.mrb[19].mxu0  ;;  %1599 = vmatprep.subr.bf16.mxu1 %v1737_v62  ;;  %1629 = vmatprep.subr.bf16.mxu0 %v1744_v47 }
 0x108   : > { %vm483_vm10 = vcmp.gt.f32.partialorder %v441_v3, 0.0  ;;  %v499_v4 = vmul.f32 0.01, %v441_v3  ;;  %v514_v5 = vsel %vm482_vm9, %v437_v0, %v498_v1 }
 0x10a   : > { %v515_v6 = vsel %vm483_vm10, %v441_v3, %v499_v4  ;;  %1600 = vmatpush3.bf16.msra.mxu1 %v1737_v62  ;;  %1630 = vmatpush3.bf16.msra.mxu0 %v1744_v47 }
 0x10b   : > { %v526_v7 = vpack.c.bf16 %v515_v6, %v514_v5  ;;  %1601 = vmatprep.subr.bf16.mxu1 %v1738_v39  ;;  %1631 = vmatprep.subr.bf16.mxu0 %v1745_v48 }
 0x10c   : > { %v1906_v8 = vpop.f32.mrb[20].mxu0 }
 0x10d   : > { %v447_v9 = vpop.f32.mrb[21].mxu0  ;;  %1581 = vmatprep.mubr.bf16.mxu1 %v526_v7 }
 0x10e   : > { %v500_v10 = vmul.f32 0.01, %v447_v9  ;;  %v1908_v11 = vpop.f32.mrb[22].mxu0  ;;  %vm484_vm11 = vcmp.gt.f32.partialorder %v447_v9, 0.0  ;;  %1602 = vmatpush3.bf16.msra.mxu1 %v1738_v39  ;;  %1632 = vmatpush3.bf16.msra.mxu0 %v1745_v48 }
 0x10f   : > { %v451_v12 = vpop.f32.mrb[23].mxu0  ;;  %1603 = vmatprep.subr.bf16.mxu1 %v1739_v40 }
 0x110   : > { %vm485_vm12 = vcmp.gt.f32.partialorder %v451_v12, 0.0  ;;  %v501_v13 = vmul.f32 0.01, %v451_v12  ;;  %v516_v14 = vsel %vm484_vm11, %v447_v9, %v500_v10 }
 0x112   : > { %v517_v15 = vsel %vm485_vm12, %v451_v12, %v501_v13  ;;  %1604 = vmatpush3.bf16.msra.mxu1 %v1739_v40 }
 0x113   : > { %v527_v16 = vpack.c.bf16 %v517_v15, %v516_v14 }
 0x114   : > { %v1910_v17 = vpop.f32.mrb[24].mxu0 }
 0x115   : > { %v457_v18 = vpop.f32.mrb[25].mxu0  ;;  %1582 = vmatmul.mubr.bf16.gmra.mrb[8].mxu1 %v527_v16 }
 0x116   : > { %v502_v19 = vmul.f32 0.01, %v457_v18  ;;  %v1912_v20 = vpop.f32.mrb[26].mxu0  ;;  %vm486_vm13 = vcmp.gt.f32.partialorder %v457_v18, 0.0 }
 0x117   : > { %v461_v21 = vpop.f32.mrb[27].mxu0 }
 0x118   : > { %vm487_vm14 = vcmp.gt.f32.partialorder %v461_v21, 0.0  ;;  %v503_v23 = vmul.f32 0.01, %v461_v21  ;;  %v518_v24 = vsel %vm486_vm13, %v457_v18, %v502_v19 }
 0x11a   : > { %v519_v26 = vsel %vm487_vm14, %v461_v21, %v503_v23 }
 0x11b   : > { %v528_v27 = vpack.c.bf16 %v519_v26, %v518_v24 }
 0x11c   : > { %v1914_v28 = vpop.f32.mrb[28].mxu0 }
 0x11d   : > { %v467_v29 = vpop.f32.mrb[29].mxu0  ;;  %1585 = vmatprep.mubr.bf16.mxu1 %v528_v27 }
 0x11e   : > { %v504_v30 = vmul.f32 0.01, %v467_v29  ;;  %v1916_v32 = vpop.f32.mrb[30].mxu0  ;;  %vm488_vm15 = vcmp.gt.f32.partialorder %v467_v29, 0.0 }
 0x11f   : > { %v471_v33 = vpop.f32.mrb[31].mxu0 }
 0x120   : > { %vm489_vm0 = vcmp.gt.f32.partialorder %v471_v33, 0.0  ;;  %v505_v35 = vmul.f32 0.01, %v471_v33  ;;  %v520_v36 = vsel %vm488_vm15, %v467_v29, %v504_v30 }
 0x122   : > { %v521_v37 = vsel %vm489_vm0, %v471_v33, %v505_v35 }
 0x123   : > { %v529_v38 = vpack.c.bf16 %v521_v37, %v520_v36 }
 0x125   : > { %1586 = vmatmul.mubr.bf16.gmra.mrb[12].mxu1 %v529_v38 }
 0x1c8   : > { %v1575_v49 = vpop.f32.mrb[0].mxu1 }
 0x1c9   : > { %v709_v50 = vmul.f32 0.01, %v1575_v49  ;;  %v628_v51 = vpop.f32.mrb[1].mxu1  ;;  %vm693_vm1 = vcmp.gt.f32.partialorder %v1575_v49, 0.0 }
 0x1ca   : > { %v707_v53 = vmul.f32 0.01, %v628_v51  ;;  %v1576_v54 = vpop.f32.mrb[2].mxu1  ;;  %vm691_vm2 = vcmp.gt.f32.partialorder %v628_v51, 0.0 }
 0x1cb   : > { %vm694_vm3 = vcmp.gt.f32.partialorder %v1576_v54, 0.0  ;;  %v710_v56 = vmul.f32 0.01, %v1576_v54  ;;  %v631_v57 = vpop.f32.mrb[3].mxu1  ;;  %v725_v59 = vsel %vm693_vm1, %v1575_v49, %v709_v50 }
 0x1cc   : > { %vm692_vm4 = vcmp.gt.f32.partialorder %v631_v57, 0.0  ;;  %v708_v58 = vmul.f32 0.01, %v631_v57  ;;  %v723_v61 = vsel %vm691_vm2, %v628_v51, %v707_v53 }
 0x1cd   : > { %v726_v60 = vsel %vm694_vm3, %v1576_v54, %v710_v56 }
 0x1ce   : > { %v740_v62 = vpack.c.bf16 %v726_v60, %v725_v59  ;;  %v724_v0 = vsel %vm692_vm4, %v631_v57, %v708_v58  ;;  %v1746_v59 = vld [vmem:[%s2017_s4 + $0x30] sm:$0xff]   ;;  %v1747_v60 = vld [vmem:[%s2017_s4 + $0x38] sm:$0xff]  }
 0x1cf   : > { %v739_v1 = vpack.c.bf16 %v724_v0, %v723_v61  ;;  %1633 = vmatprep.subr.bf16.mxu0 %v1746_v59  ;;  %v1748_v61 = vld [vmem:[%s2018_s5] sm:$0xff]   ;;  %v1750_v0 = vld [vmem:[%s2018_s5 + $0x10] sm:$0xff]  }
 0x1d0   : > { %1634 = vmatpush3.bf16.msra.mxu0 %v1746_v59  ;;  %1685 = vmatprep.subr.bf16.mxu1 %v1748_v61 }
 0x1d1   : > { %1605 = vmatprep.mubr.bf16.mxu1 %v739_v1  ;;  %1635 = vmatprep.subr.bf16.mxu0 %v1747_v60  ;;  %v1751_v1 = vld [vmem:[%s2018_s5 + $0x18] sm:$0xff]  }
 0x1d2   : > { %1606 = vmatmul.mubr.bf16.vlgmr.msra.gmra.mrb[16].mxu1 %v740_v62  ;;  %v1749_v62 = vld [vmem:[%s2018_s5 + $0x8] sm:$0xff]  }
 0x1d3   : > { %1693 = vmatpush3.bf16.msra.mxu1 %v1748_v61 }
 0x1d4   : > { %1636 = vmatpush3.bf16.msra.mxu0 %v1747_v60  ;;  %1686 = vmatprep.subr.bf16.mxu1 %v1749_v62 }
 0x1d5   : > { %1653 = vmatprep.subr.bf16.mxu0 %v1748_v61 }
 0x1d7   : > { %1694 = vmatpush3.bf16.msra.mxu1 %v1749_v62 }
 0x1d8   : > { %v1579_v3 = vpop.f32.mrb[4].mxu1  ;;  %1687 = vmatprep.subr.bf16.mxu1 %v1750_v0 }
 0x1d9   : > { %v713_v4 = vmul.f32 0.01, %v1579_v3  ;;  %v644_v5 = vpop.f32.mrb[5].mxu1  ;;  %vm697_vm5 = vcmp.gt.f32.partialorder %v1579_v3, 0.0 }
 0x1da   : > { %v711_v6 = vmul.f32 0.01, %v644_v5  ;;  %v1580_v7 = vpop.f32.mrb[6].mxu1  ;;  %vm695_vm6 = vcmp.gt.f32.partialorder %v644_v5, 0.0 }
 0x1db   : > { %vm698_vm7 = vcmp.gt.f32.partialorder %v1580_v7, 0.0  ;;  %v714_v9 = vmul.f32 0.01, %v1580_v7  ;;  %v647_v10 = vpop.f32.mrb[7].mxu1  ;;  %v729_v13 = vsel %vm697_vm5, %v1579_v3, %v713_v4  ;;  %1695 = vmatpush3.bf16.msra.mxu1 %v1750_v0  ;;  %v1752_v3 = vld [vmem:[%s2018_s5 + $0x20] sm:$0xff]   ;;  %v1753_v4 = vld [vmem:[%s2018_s5 + $0x28] sm:$0xff]  }
 0x1dc   : > { %vm696_vm8 = vcmp.gt.f32.partialorder %v647_v10, 0.0  ;;  %v712_v12 = vmul.f32 0.01, %v647_v10  ;;  %v727_v15 = vsel %vm695_vm6, %v644_v5, %v711_v6  ;;  %1688 = vmatprep.subr.bf16.mxu1 %v1751_v1 }
 0x1dd   : > { %v730_v14 = vsel %vm698_vm7, %v1580_v7, %v714_v9 }
 0x1de   : > { %v728_v16 = vsel %vm696_vm8, %v647_v10, %v712_v12  ;;  %v742_v18 = vpack.c.bf16 %v730_v14, %v729_v13 }
 0x1df   : > { %v741_v19 = vpack.c.bf16 %v728_v16, %v727_v15  ;;  %1696 = vmatpush3.bf16.msra.mxu1 %v1751_v1 }
 0x1e0   : > { %1689 = vmatprep.subr.bf16.mxu1 %v1752_v3 }
 0x1e1   : > { %1609 = vmatprep.mubr.bf16.mxu1 %v741_v19 }
 0x1e2   : > { %1610 = vmatmul.mubr.bf16.gmra.mrb[20].mxu1 %v742_v18 }
 0x1e3   : > { %1697 = vmatpush3.bf16.msra.mxu1 %v1752_v3 }
 0x1e4   : > { %1690 = vmatprep.subr.bf16.mxu1 %v1753_v4 }
 0x1e7   : > { %1698 = vmatpush3.bf16.msra.mxu1 %v1753_v4 }
 0x1e8   : > { %v1583_v21 = vpop.f32.mrb[8].mxu1 }
 0x1e9   : > { %v717_v23 = vmul.f32 0.01, %v1583_v21  ;;  %v660_v24 = vpop.f32.mrb[9].mxu1  ;;  %vm701_vm9 = vcmp.gt.f32.partialorder %v1583_v21, 0.0 }
 0x1ea   : > { %v715_v26 = vmul.f32 0.01, %v660_v24  ;;  %v1584_v27 = vpop.f32.mrb[10].mxu1  ;;  %vm699_vm10 = vcmp.gt.f32.partialorder %v660_v24, 0.0 }
 0x1eb   : > { %vm702_vm11 = vcmp.gt.f32.partialorder %v1584_v27, 0.0  ;;  %v718_v29 = vmul.f32 0.01, %v1584_v27  ;;  %v663_v30 = vpop.f32.mrb[11].mxu1  ;;  %v733_v35 = vsel %vm701_vm9, %v1583_v21, %v717_v23 }
 0x1ec   : > { %vm700_vm12 = vcmp.gt.f32.partialorder %v663_v30, 0.0  ;;  %v716_v33 = vmul.f32 0.01, %v663_v30  ;;  %v731_v37 = vsel %vm699_vm10, %v660_v24, %v715_v26 }
 0x1ed   : > { %v734_v36 = vsel %vm702_vm11, %v1584_v27, %v718_v29 }
 0x1ee   : > { %v732_v38 = vsel %vm700_vm12, %v663_v30, %v716_v33  ;;  %v744_v39 = vpack.c.bf16 %v734_v36, %v733_v35 }
 0x1ef   : > { %v743_v40 = vpack.c.bf16 %v732_v38, %v731_v37 }
 0x1f1   : > { %1613 = vmatprep.mubr.bf16.mxu1 %v743_v40 }
 0x1f2   : > { %1614 = vmatmul.mubr.bf16.gmra.mrb[24].mxu1 %v744_v39 }
 0x1f8   : > { %v1587_v42 = vpop.f32.mrb[12].mxu1 }
 0x1f9   : > { %v721_v43 = vmul.f32 0.01, %v1587_v42  ;;  %v676_v45 = vpop.f32.mrb[13].mxu1  ;;  %vm705_vm13 = vcmp.gt.f32.partialorder %v1587_v42, 0.0 }
 0x1fa   : > { %v719_v46 = vmul.f32 0.01, %v676_v45  ;;  %v1588_v47 = vpop.f32.mrb[14].mxu1  ;;  %vm703_vm14 = vcmp.gt.f32.partialorder %v676_v45, 0.0 }
 0x1fb   : > { %vm706_vm15 = vcmp.gt.f32.partialorder %v1588_v47, 0.0  ;;  %v722_v48 = vmul.f32 0.01, %v1588_v47  ;;  %v679_v49 = vpop.f32.mrb[15].mxu1  ;;  %v737_v51 = vsel %vm705_vm13, %v1587_v42, %v721_v43 }
 0x1fc   : > { %vm704_vm0 = vcmp.gt.f32.partialorder %v679_v49, 0.0  ;;  %v720_v50 = vmul.f32 0.01, %v679_v49  ;;  %v735_v54 = vsel %vm703_vm14, %v676_v45, %v719_v46 }
 0x1fd   : > { %v738_v53 = vsel %vm706_vm15, %v1588_v47, %v722_v48 }
 0x1fe   : > { %v736_v56 = vsel %vm704_vm0, %v679_v49, %v720_v50  ;;  %v746_v57 = vpack.c.bf16 %v738_v53, %v737_v51 }
 0x1ff   : > { %v745_v58 = vpack.c.bf16 %v736_v56, %v735_v54 }
 0x201   : > { %1617 = vmatprep.mubr.bf16.mxu1 %v745_v58 }
 0x202   : > { %1618 = vmatmul.mubr.bf16.gmra.mrb[28].mxu1 %v746_v57 }
 0x2a5   : > { %v1607_v5 = vpop.f32.mrb[16].mxu1 }
 0x2a6   : > { %v926_v6 = vmul.f32 0.01, %v1607_v5  ;;  %v845_v7 = vpop.f32.mrb[17].mxu1  ;;  %vm910_vm1 = vcmp.gt.f32.partialorder %v1607_v5, 0.0 }
 0x2a7   : > { %v924_v9 = vmul.f32 0.01, %v845_v7  ;;  %v1608_v10 = vpop.f32.mrb[18].mxu1  ;;  %vm908_vm2 = vcmp.gt.f32.partialorder %v845_v7, 0.0 }
 0x2a8   : > { %vm911_vm3 = vcmp.gt.f32.partialorder %v1608_v10, 0.0  ;;  %v927_v12 = vmul.f32 0.01, %v1608_v10  ;;  %v848_v13 = vpop.f32.mrb[19].mxu1  ;;  %v942_v15 = vsel %vm910_vm1, %v1607_v5, %v926_v6 }
 0x2a9   : > { %vm909_vm4 = vcmp.gt.f32.partialorder %v848_v13, 0.0  ;;  %v925_v14 = vmul.f32 0.01, %v848_v13  ;;  %v940_v18 = vsel %vm908_vm2, %v845_v7, %v924_v9 }
 0x2aa   : > { %v943_v16 = vsel %vm911_vm3, %v1608_v10, %v927_v12 }
 0x2ab   : > { %v957_v19 = vpack.c.bf16 %v943_v16, %v942_v15  ;;  %v941_v21 = vsel %vm909_vm4, %v848_v13, %v925_v14  ;;  %v1754_v15 = vld [vmem:[%s2018_s5 + $0x30] sm:$0xff]   ;;  %v1755_v16 = vld [vmem:[%s2018_s5 + $0x38] sm:$0xff]  }
 0x2ac   : > { %v956_v23 = vpack.c.bf16 %v941_v21, %v940_v18  ;;  %1691 = vmatprep.subr.bf16.mxu1 %v1754_v15 }
 0x2ad   : > { %1699 = vmatpush3.bf16.msra.mxu1 %v1754_v15 }
 0x2ae   : > { %1637 = vmatprep.mubr.bf16.mxu0 %v956_v23  ;;  %1692 = vmatprep.subr.bf16.mxu1 %v1755_v16 }
 0x2af   : > { %1638 = vmatmul.mubr.bf16.vlgmr.msra.gmra.mrb[32].mxu0 %v957_v19 }
 0x2b0   : > { %1654 = vmatpush3.bf16.msra.mxu0 %v1748_v61 }
 0x2b1   : > { %1655 = vmatprep.subr.bf16.mxu0 %v1749_v62  ;;  %1700 = vmatpush3.bf16.msra.mxu1 %v1755_v16 }
 0x2b4   : > { %1656 = vmatpush3.bf16.msra.mxu0 %v1749_v62 }
 0x2b5   : > { %v1611_v24 = vpop.f32.mrb[20].mxu1  ;;  %1657 = vmatprep.subr.bf16.mxu0 %v1750_v0 }
 0x2b6   : > { %v930_v26 = vmul.f32 0.01, %v1611_v24  ;;  %v861_v27 = vpop.f32.mrb[21].mxu1  ;;  %vm914_vm5 = vcmp.gt.f32.partialorder %v1611_v24, 0.0 }
 0x2b7   : > { %v928_v29 = vmul.f32 0.01, %v861_v27  ;;  %v1612_v30 = vpop.f32.mrb[22].mxu1  ;;  %vm912_vm6 = vcmp.gt.f32.partialorder %v861_v27, 0.0 }
 0x2b8   : > { %vm915_vm7 = vcmp.gt.f32.partialorder %v1612_v30, 0.0  ;;  %v931_v33 = vmul.f32 0.01, %v1612_v30  ;;  %v864_v35 = vpop.f32.mrb[23].mxu1  ;;  %1658 = vmatpush3.bf16.msra.mxu0 %v1750_v0  ;;  %v946_v37 = vsel %vm914_vm5, %v1611_v24, %v930_v26 }
 0x2b9   : > { %vm913_vm8 = vcmp.gt.f32.partialorder %v864_v35, 0.0  ;;  %v929_v36 = vmul.f32 0.01, %v864_v35  ;;  %1659 = vmatprep.subr.bf16.mxu0 %v1751_v1  ;;  %v944_v39 = vsel %vm912_vm6, %v861_v27, %v928_v29 }
 0x2ba   : > { %v947_v38 = vsel %vm915_vm7, %v1612_v30, %v931_v33 }
 0x2bb   : > { %v945_v40 = vsel %vm913_vm8, %v864_v35, %v929_v36  ;;  %v959_v42 = vpack.c.bf16 %v947_v38, %v946_v37 }
 0x2bc   : > { %v958_v43 = vpack.c.bf16 %v945_v40, %v944_v39  ;;  %1660 = vmatpush3.bf16.msra.mxu0 %v1751_v1 }
 0x2bd   : > { %1661 = vmatprep.subr.bf16.mxu0 %v1752_v3 }
 0x2be   : > { %1641 = vmatprep.mubr.bf16.mxu0 %v958_v43 }
 0x2bf   : > { %1642 = vmatmul.mubr.bf16.gmra.mrb[36].mxu0 %v959_v42 }
 0x2c0   : > { %1662 = vmatpush3.bf16.msra.mxu0 %v1752_v3 }
 0x2c1   : > { %1663 = vmatprep.subr.bf16.mxu0 %v1753_v4 }
 0x2c4   : > { %1664 = vmatpush3.bf16.msra.mxu0 %v1753_v4 }
 0x2c5   : > { %v1615_v45 = vpop.f32.mrb[24].mxu1  ;;  %1665 = vmatprep.subr.bf16.mxu0 %v1754_v15 }
 0x2c6   : > { %v934_v46 = vmul.f32 0.01, %v1615_v45  ;;  %v877_v47 = vpop.f32.mrb[25].mxu1  ;;  %vm918_vm9 = vcmp.gt.f32.partialorder %v1615_v45, 0.0 }
 0x2c7   : > { %v932_v48 = vmul.f32 0.01, %v877_v47  ;;  %v1616_v49 = vpop.f32.mrb[26].mxu1  ;;  %vm916_vm10 = vcmp.gt.f32.partialorder %v877_v47, 0.0 }
 0x2c8   : > { %vm919_vm11 = vcmp.gt.f32.partialorder %v1616_v49, 0.0  ;;  %v935_v50 = vmul.f32 0.01, %v1616_v49  ;;  %v880_v51 = vpop.f32.mrb[27].mxu1  ;;  %v950_v54 = vsel %vm918_vm9, %v1615_v45, %v934_v46  ;;  %1666 = vmatpush3.bf16.msra.mxu0 %v1754_v15 }
 0x2c9   : > { %vm917_vm12 = vcmp.gt.f32.partialorder %v880_v51, 0.0  ;;  %v933_v53 = vmul.f32 0.01, %v880_v51  ;;  %v948_v57 = vsel %vm916_vm10, %v877_v47, %v932_v48  ;;  %1667 = vmatprep.subr.bf16.mxu0 %v1755_v16 }
 0x2ca   : > { %v951_v56 = vsel %vm919_vm11, %v1616_v49, %v935_v50 }
 0x2cb   : > { %v949_v58 = vsel %vm917_vm12, %v880_v51, %v933_v53  ;;  %v961_v59 = vpack.c.bf16 %v951_v56, %v950_v54 }
 0x2cc   : > { %v960_v60 = vpack.c.bf16 %v949_v58, %v948_v57  ;;  %1668 = vmatpush3.bf16.msra.mxu0 %v1755_v16 }
 0x2ce   : > { %1645 = vmatprep.mubr.bf16.mxu0 %v960_v60 }
 0x2cf   : > { %1646 = vmatmul.mubr.bf16.gmra.mrb[40].mxu0 %v961_v59 }
 0x2d5   : > { %v1619_v61 = vpop.f32.mrb[28].mxu1 }
 0x2d6   : > { %v938_v62 = vmul.f32 0.01, %v1619_v61  ;;  %v893_v0 = vpop.f32.mrb[29].mxu1  ;;  %vm922_vm13 = vcmp.gt.f32.partialorder %v1619_v61, 0.0 }
 0x2d7   : > { %v936_v1 = vmul.f32 0.01, %v893_v0  ;;  %v1620_v3 = vpop.f32.mrb[30].mxu1  ;;  %vm920_vm14 = vcmp.gt.f32.partialorder %v893_v0, 0.0 }
 0x2d8   : > { %vm923_vm15 = vcmp.gt.f32.partialorder %v1620_v3, 0.0  ;;  %v939_v4 = vmul.f32 0.01, %v1620_v3  ;;  %v896_v5 = vpop.f32.mrb[31].mxu1  ;;  %v954_v7 = vsel %vm922_vm13, %v1619_v61, %v938_v62 }
 0x2d9   : > { %vm921_vm0 = vcmp.gt.f32.partialorder %v896_v5, 0.0  ;;  %v937_v6 = vmul.f32 0.01, %v896_v5  ;;  %v952_v10 = vsel %vm920_vm14, %v893_v0, %v936_v1 }
 0x2da   : > { %v955_v9 = vsel %vm923_vm15, %v1620_v3, %v939_v4 }
 0x2db   : > { %v953_v12 = vsel %vm921_vm0, %v896_v5, %v937_v6  ;;  %v963_v13 = vpack.c.bf16 %v955_v9, %v954_v7 }
 0x2dc   : > { %v962_v14 = vpack.c.bf16 %v953_v12, %v952_v10 }
 0x2de   : > { %1649 = vmatprep.mubr.bf16.mxu0 %v962_v14 }
 0x2df   : > { %1650 = vmatmul.mubr.bf16.gmra.mrb[44].mxu0 %v963_v13 }
 0x382   : > { %v1639_v18 = vpop.f32.mrb[32].mxu0 }
 0x383   : > { %v1143_v19 = vmul.f32 0.01, %v1639_v18  ;;  %v1062_v21 = vpop.f32.mrb[33].mxu0  ;;  %vm1127_vm1 = vcmp.gt.f32.partialorder %v1639_v18, 0.0 }
 0x384   : > { %v1141_v23 = vmul.f32 0.01, %v1062_v21  ;;  %v1640_v24 = vpop.f32.mrb[34].mxu0  ;;  %vm1125_vm2 = vcmp.gt.f32.partialorder %v1062_v21, 0.0 }
 0x385   : > { %vm1128_vm3 = vcmp.gt.f32.partialorder %v1640_v24, 0.0  ;;  %v1144_v26 = vmul.f32 0.01, %v1640_v24  ;;  %v1065_v27 = vpop.f32.mrb[35].mxu0  ;;  %v1159_v30 = vsel %vm1127_vm1, %v1639_v18, %v1143_v19 }
 0x386   : > { %vm1126_vm4 = vcmp.gt.f32.partialorder %v1065_v27, 0.0  ;;  %v1142_v29 = vmul.f32 0.01, %v1065_v27  ;;  %v1157_v35 = vsel %vm1125_vm2, %v1062_v21, %v1141_v23 }
 0x387   : > { %v1160_v33 = vsel %vm1128_vm3, %v1640_v24, %v1144_v26 }
 0x388   : > { %v1174_v36 = vpack.c.bf16 %v1160_v33, %v1159_v30  ;;  %v1158_v37 = vsel %vm1126_vm4, %v1065_v27, %v1142_v29 }
 0x389   : > { %v1173_v38 = vpack.c.bf16 %v1158_v37, %v1157_v35 }
 0x38b   : > { %1669 = vmatprep.mubr.bf16.mxu0 %v1173_v38 }
 0x38c   : > { %1670 = vmatmul.mubr.bf16.vlgmr.msra.gmra.mrb[48].mxu0 %v1174_v36 }
 0x392   : > { %v1643_v39 = vpop.f32.mrb[36].mxu0 }
 0x393   : > { %v1147_v40 = vmul.f32 0.01, %v1643_v39  ;;  %v1078_v42 = vpop.f32.mrb[37].mxu0  ;;  %vm1131_vm5 = vcmp.gt.f32.partialorder %v1643_v39, 0.0 }
 0x394   : > { %v1145_v43 = vmul.f32 0.01, %v1078_v42  ;;  %v1644_v45 = vpop.f32.mrb[38].mxu0  ;;  %vm1129_vm6 = vcmp.gt.f32.partialorder %v1078_v42, 0.0 }
 0x395   : > { %vm1132_vm7 = vcmp.gt.f32.partialorder %v1644_v45, 0.0  ;;  %v1148_v46 = vmul.f32 0.01, %v1644_v45  ;;  %v1081_v47 = vpop.f32.mrb[39].mxu0  ;;  %v1163_v49 = vsel %vm1131_vm5, %v1643_v39, %v1147_v40 }
 0x396   : > { %vm1130_vm8 = vcmp.gt.f32.partialorder %v1081_v47, 0.0  ;;  %v1146_v48 = vmul.f32 0.01, %v1081_v47  ;;  %v1161_v51 = vsel %vm1129_vm6, %v1078_v42, %v1145_v43 }
 0x397   : > { %v1164_v50 = vsel %vm1132_vm7, %v1644_v45, %v1148_v46 }
 0x398   : > { %v1176_v53 = vpack.c.bf16 %v1164_v50, %v1163_v49  ;;  %v1162_v54 = vsel %vm1130_vm8, %v1081_v47, %v1146_v48 }
 0x399   : > { %v1175_v56 = vpack.c.bf16 %v1162_v54, %v1161_v51 }
 0x39b   : > { %1673 = vmatprep.mubr.bf16.mxu1 %v1175_v56 }
 0x39c   : > { %1674 = vmatmul.mubr.bf16.vlgmr.msra.gmra.mrb[32].mxu1 %v1176_v53 }
 0x3a2   : > { %v1647_v57 = vpop.f32.mrb[40].mxu0 }
 0x3a3   : > { %v1151_v58 = vmul.f32 0.01, %v1647_v57  ;;  %v1094_v59 = vpop.f32.mrb[41].mxu0  ;;  %vm1135_vm9 = vcmp.gt.f32.partialorder %v1647_v57, 0.0 }
 0x3a4   : > { %v1149_v60 = vmul.f32 0.01, %v1094_v59  ;;  %v1648_v61 = vpop.f32.mrb[42].mxu0  ;;  %vm1133_vm10 = vcmp.gt.f32.partialorder %v1094_v59, 0.0 }
 0x3a5   : > { %vm1136_vm11 = vcmp.gt.f32.partialorder %v1648_v61, 0.0  ;;  %v1152_v62 = vmul.f32 0.01, %v1648_v61  ;;  %v1097_v0 = vpop.f32.mrb[43].mxu0  ;;  %v1167_v3 = vsel %vm1135_vm9, %v1647_v57, %v1151_v58 }
 0x3a6   : > { %vm1134_vm12 = vcmp.gt.f32.partialorder %v1097_v0, 0.0  ;;  %v1150_v1 = vmul.f32 0.01, %v1097_v0  ;;  %v1165_v5 = vsel %vm1133_vm10, %v1094_v59, %v1149_v60 }
 0x3a7   : > { %v1168_v4 = vsel %vm1136_vm11, %v1648_v61, %v1152_v62 }
 0x3a8   : > { %v1166_v6 = vsel %vm1134_vm12, %v1097_v0, %v1150_v1  ;;  %v1178_v7 = vpack.c.bf16 %v1168_v4, %v1167_v3 }
 0x3a9   : > { %v1177_v9 = vpack.c.bf16 %v1166_v6, %v1165_v5 }
 0x3ab   : > { %1677 = vmatprep.mubr.bf16.mxu1 %v1177_v9 }
 0x3ac   : > { %1678 = vmatmul.mubr.bf16.gmra.mrb[36].mxu1 %v1178_v7 }
 0x3b2   : > { %v1651_v10 = vpop.f32.mrb[44].mxu0 }
 0x3b3   : > { %v1155_v12 = vmul.f32 0.01, %v1651_v10  ;;  %v1110_v13 = vpop.f32.mrb[45].mxu0  ;;  %vm1139_vm13 = vcmp.gt.f32.partialorder %v1651_v10, 0.0 }
 0x3b4   : > { %v1153_v14 = vmul.f32 0.01, %v1110_v13  ;;  %v1652_v15 = vpop.f32.mrb[46].mxu0  ;;  %vm1137_vm14 = vcmp.gt.f32.partialorder %v1110_v13, 0.0 }
 0x3b5   : > { %vm1140_vm15 = vcmp.gt.f32.partialorder %v1652_v15, 0.0  ;;  %v1156_v16 = vmul.f32 0.01, %v1652_v15  ;;  %v1113_v18 = vpop.f32.mrb[47].mxu0  ;;  %v1171_v21 = vsel %vm1139_vm13, %v1651_v10, %v1155_v12 }
 0x3b6   : > { %vm1138_vm0 = vcmp.gt.f32.partialorder %v1113_v18, 0.0  ;;  %v1154_v19 = vmul.f32 0.01, %v1113_v18  ;;  %v1169_v24 = vsel %vm1137_vm14, %v1110_v13, %v1153_v14 }
 0x3b7   : > { %v1172_v23 = vsel %vm1140_vm15, %v1652_v15, %v1156_v16 }
 0x3b8   : > { %v1170_v26 = vsel %vm1138_vm0, %v1113_v18, %v1154_v19  ;;  %v1180_v27 = vpack.c.bf16 %v1172_v23, %v1171_v21 }
 0x3b9   : > { %v1179_v29 = vpack.c.bf16 %v1170_v26, %v1169_v24 }
 0x3bb   : > { %1681 = vmatprep.mubr.bf16.mxu1 %v1179_v29 }
 0x3bc   : > { %1682 = vmatmul.mubr.bf16.gmra.mrb[40].mxu1 %v1180_v27 }
 0x45f   : > { %v1671_v30 = vpop.f32.mrb[48].mxu0 }
 0x460   : > { %v1344_v33 = vadd.f32 %v1671_v30, %v1875_v31  ;;  %v1279_v35 = vpop.f32.mrb[49].mxu0 }
 0x461   : > { %v1342_v36 = vadd.f32 %v1279_v35, %v1871_v22  ;;  %v1672_v37 = vpop.f32.mrb[50].mxu0 }
 0x462   : > { %1360 = vst [vmem:[%s1976_s13 + $0x10] sm:$0xff] %v1344_v33  ;;  %v1345_v38 = vadd.f32 %v1672_v37, %v1877_v34  ;;  %v1282_v39 = vpop.f32.mrb[51].mxu0 }
 0x463   : > { %1358 = vst [vmem:[%s1976_s13] sm:$0xff] %v1342_v36  ;;  %v1343_v40 = vadd.f32 %v1282_v39, %v1873_v25 }
 0x464   : > { %1361 = vst [vmem:[%s1976_s13 + $0x18] sm:$0xff] %v1345_v38 }
 0x465   : > { %1359 = vst [vmem:[%s1976_s13 + $0x8] sm:$0xff] %v1343_v40 }
 0x46f   : > { %v1675_v42 = vpop.f32.mrb[32].mxu1 }
 0x470   : > { %v1348_v31 = vadd.f32 %v1675_v42, %v1892_v52  ;;  %v1295_v43 = vpop.f32.mrb[33].mxu1 }
 0x471   : > { %v1346_v22 = vadd.f32 %v1295_v43, %v1882_v41  ;;  %v1676_v45 = vpop.f32.mrb[34].mxu1 }
 0x472   : > { %1364 = vst [vmem:[%s1976_s13 + $0x30] sm:$0xff] %v1348_v31  ;;  %v1349_v34 = vadd.f32 %v1676_v45, %v1894_v55  ;;  %v1298_v46 = vpop.f32.mrb[35].mxu1 }
 0x473   : > { %1362 = vst [vmem:[%s1976_s13 + $0x20] sm:$0xff] %v1346_v22  ;;  %v1347_v25 = vadd.f32 %v1298_v46, %v1884_v44 }
 0x474   : > { %1365 = vst [vmem:[%s1976_s13 + $0x38] sm:$0xff] %v1349_v34 }
 0x475   : > { %1363 = vst [vmem:[%s1976_s13 + $0x28] sm:$0xff] %v1347_v25 }
 0x47f   : > { %v1679_v47 = vpop.f32.mrb[36].mxu1 }
 0x480   : > { %v1352_v52 = vadd.f32 %v1679_v47, %v1906_v8  ;;  %v1311_v48 = vpop.f32.mrb[37].mxu1 }
 0x481   : > { %v1350_v41 = vadd.f32 %v1311_v48, %v1902_v63  ;;  %v1680_v49 = vpop.f32.mrb[38].mxu1 }
 0x482   : > { %1368 = vst [vmem:[%s1976_s13 + $0x50] sm:$0xff] %v1352_v52  ;;  %v1353_v55 = vadd.f32 %v1680_v49, %v1908_v11  ;;  %v1314_v50 = vpop.f32.mrb[39].mxu1 }
 0x483   : > { %1366 = vst [vmem:[%s1976_s13 + $0x40] sm:$0xff] %v1350_v41  ;;  %v1351_v44 = vadd.f32 %v1314_v50, %v1904_v2 }
 0x484   : > { %1369 = vst [vmem:[%s1976_s13 + $0x58] sm:$0xff] %v1353_v55 }
 0x485   : > { %1367 = vst [vmem:[%s1976_s13 + $0x48] sm:$0xff] %v1351_v44 }
 0x48f   : > { %v1683_v51 = vpop.f32.mrb[40].mxu1 }
 0x490   : > { %v1356_v8 = vadd.f32 %v1683_v51, %v1914_v28  ;;  %v1327_v53 = vpop.f32.mrb[41].mxu1 }
 0x491   : > { %v1354_v54 = vadd.f32 %v1327_v53, %v1910_v17  ;;  %v1684_v63 = vpop.f32.mrb[42].mxu1 }
 0x492   : > { %1372 = vst [vmem:[%s1976_s13 + $0x70] sm:$0xff] %v1356_v8  ;;  %v1357_v56 = vadd.f32 %v1684_v63, %v1916_v32  ;;  %v1330_v57 = vpop.f32.mrb[43].mxu1 }
 0x493   : > { %1370 = vst [vmem:[%s1976_s13 + $0x60] sm:$0xff] %v1354_v54  ;;  %v1355_v11 = vadd.f32 %v1330_v57, %v1912_v20 }
 0x494   : > { %1373 = vst [vmem:[%s1976_s13 + $0x78] sm:$0xff] %v1357_v56 }
 0x495   : > { %1371 = vst [vmem:[%s1976_s13 + $0x68] sm:$0xff] %v1355_v11 }
 0x496 PF: > { %s16_s21 = sadd.s32 1, %s1762_s21  }
 0x497   : > { %p13_p4 = scmp.ge.s32.totalorder %s16_s21, 4  }
 0x499   :  { %15 = sbr.rel (!%p13_p4) target bundleno = 1 (0x1), region = 74 }

</bundles_post_ra>
